<compile_context>
chip_gen: v7x
topology: tpu7x:2x2x1
jax: 0.10.0
libtpu: 0.0.40
codegen_flags: <defaults>
</compile_context>

<pallas_src>
import functools

import jax
import jax.numpy as jnp
from jax import lax
from jax.experimental import pallas as pl
from jax.experimental.pallas import tpu as pltpu

_SUBLANES = 8
_LANES = 128
_MIN_TILE_ROWS = 16            # covers f32/bf16 sublane packing
_LANE_DENSE_WIDTHS = (512, 256, 128)


def _vmem_plan():
    """Generation-aware (per-input-buffer byte budget, vmem_limit_bytes).

    v7x (64 MiB/TC)  -> ~8 MiB per buffer, 48 MiB scoped limit.
    v5e/v6e (128 MiB) -> ~16 MiB per buffer, 96 MiB scoped limit.
    Falls back to the conservative v7x plan if the query is unavailable.
    """
    cap = 64 * 1024 * 1024
    try:
        info = pltpu.get_tpu_info()
        cap = int(getattr(info, "vmem_capacity_bytes", cap)) or cap
    except Exception:
        pass
    per_buf = max(2 * 1024 * 1024, min(16 * 1024 * 1024, cap // 8))
    vmem_limit = max(6 * per_buf, min(96 * 1024 * 1024, (3 * cap) // 4))
    return per_buf, vmem_limit


def _bce_partial_sum_kernel(x_ref, y_ref, out_ref, *, n_rows, tile_rows, has_tail):
    """One row-tile of stable BCE-with-logits reduced to a partial sum.

    x_ref, y_ref: (tile_rows, cols) blocks in the inputs' native dtypes.
    out_ref:      (1, 8, 128) f32 block; the scalar partial sum is splatted.
    """
    x = x_ref[...].astype(jnp.float32)
    y = y_ref[...].astype(jnp.float32)

    # Numerically stable BCE with logits: max(x,0) - x*y + log1p(exp(-|x|)).
    # log1p is written with Kahan's formula so the tiny log term is kept even
    # when 1 + exp(-|x|) rounds to 1 (matches PyTorch's log1p precision) while
    # only using ops that are guaranteed to lower on Mosaic.
    z = jnp.exp(-jnp.abs(x))
    u = 1.0 + z
    log1p_z = jnp.where(u == 1.0, z, jnp.log(u) * (z / (u - 1.0)))
    loss = jnp.maximum(x, 0.0) - x * y + log1p_z

    def _splat(v):
        return jnp.zeros(out_ref.shape, jnp.float32) + v

    if has_tail:
        i = pl.program_id(0)
        last = pl.num_programs(0) - 1

        @pl.when(i == last)
        def _():
            # NOTE: rows >= n_rows in the last tile are uninitialized block
            # padding; the elementwise where() must run BEFORE the reduction
            # so garbage (possibly Inf/NaN) never reaches the sum.
            row_ids = i * tile_rows + lax.broadcasted_iota(
                jnp.int32, loss.shape, 0)
            out_ref[...] = _splat(
                jnp.sum(jnp.where(row_ids < n_rows, loss, 0.0)))

        @pl.when(i != last)
        def _():
            out_ref[...] = _splat(jnp.sum(loss))
    else:
        out_ref[...] = _splat(jnp.sum(loss))


def custom_bce_with_logits_loss(inputs, targets, multiplier, *, max_tile_rows=None):
    """multiplier * BCEWithLogitsLoss(inputs, targets) with mean reduction."""
    if inputs.shape != targets.shape:
        raise ValueError("inputs and targets must have the same shape")
    total_elems = int(inputs.size)
    if total_elems == 0:
        raise ValueError("empty inputs are not supported")

    c_last = inputs.shape[-1] if inputs.ndim >= 1 else 1

    # ---- Layout: prefer lane-dense (last dim a multiple of 128). -----------
    if inputs.ndim >= 2 and c_last % _LANES == 0:
        x2 = inputs.reshape(-1, c_last)
        y2 = targets.reshape(-1, c_last)
    else:
        w = next((w for w in _LANE_DENSE_WIDTHS if total_elems % w == 0), None)
        if w is not None:
            # Flatten and view as (-1, w): full-width unmasked vector ops.
            x2 = inputs.reshape(-1, w)
            y2 = targets.reshape(-1, w)
        elif inputs.ndim >= 2:
            # Ragged fallback: keep the natural (N, C) layout.
            x2 = inputs.reshape(-1, c_last)
            y2 = targets.reshape(-1, c_last)
        else:
            x2 = inputs.reshape(1, -1)
            y2 = targets.reshape(1, -1)

    n, cols = x2.shape

    # ---- Row-tile size from the per-buffer VMEM byte budget. ---------------
    per_buf, vmem_limit = _vmem_plan()
    itemsize = max(jnp.dtype(x2.dtype).itemsize, jnp.dtype(y2.dtype).itemsize)
    cols_padded = pl.cdiv(cols, _LANES) * _LANES       # VMEM pads lanes to 128
    bytes_per_row = cols_padded * itemsize

    rows = max(_MIN_TILE_ROWS, per_buf // bytes_per_row)
    if max_tile_rows is not None:                       # testing / override hook
        rows = min(rows, max_tile_rows)
    tr = max(_MIN_TILE_ROWS, (rows // _MIN_TILE_ROWS) * _MIN_TILE_ROWS)

    if tr >= n:
        total_bytes = n * cols_padded * itemsize * 2
        if total_bytes >= (1 << 20) and n >= 2 * _MIN_TILE_ROWS:
            # Mid-sized input that would otherwise be one block: split it so
            # DMA overlaps compute and (v7x) both TensorCores get work.
            target_tiles = min(8, n // _MIN_TILE_ROWS)
            tr = pl.cdiv(pl.cdiv(n, target_tiles), _MIN_TILE_ROWS) * _MIN_TILE_ROWS
        else:
            tr = n     # tiny input: single block over the full extent is legal
    grid_n = pl.cdiv(n, tr)
    has_tail = (n % tr) != 0

    # ---- Cost hint so XLA can schedule around this bandwidth-bound call. ---
    out_bytes = grid_n * _SUBLANES * _LANES * 4
    cost = pl.CostEstimate(
        flops=8 * total_elems,
        transcendentals=2 * total_elems,
        bytes_accessed=(x2.size * x2.dtype.itemsize
                        + y2.size * y2.dtype.itemsize + out_bytes),
    )

    partials = pl.pallas_call(
        functools.partial(_bce_partial_sum_kernel,
                          n_rows=n, tile_rows=tr, has_tail=has_tail),
        grid=(grid_n,),
        in_specs=[
            pl.BlockSpec((tr, cols), lambda i: (i, 0)),   # logits (native dtype)
            pl.BlockSpec((tr, cols), lambda i: (i, 0)),   # targets (native dtype)
        ],
        out_specs=pl.BlockSpec((1, _SUBLANES, _LANES), lambda i: (i, 0, 0)),
        out_shape=jax.ShapeDtypeStruct((grid_n, _SUBLANES, _LANES), jnp.float32),
        compiler_params=pltpu.CompilerParams(
            dimension_semantics=("parallel",),
            vmem_limit_bytes=vmem_limit,
        ),
        cost_estimate=cost,
    )(x2, y2)

    total_sum = jnp.sum(partials[:, 0, 0])
    return jnp.asarray(multiplier, jnp.float32) * (total_sum / float(total_elems))


def _ref_bce(x, y, m):
    # Independent pure-JAX reference (same math as torch BCEWithLogitsLoss).
    per_elem = -(y * jax.nn.log_sigmoid(x) + (1.0 - y) * jax.nn.log_sigmoid(-x))
    return m * jnp.mean(per_elem)


if __name__ == "__main__":
    key = jax.random.PRNGKey(0)
    k1, k2, k3, k4, k5, k6 = jax.random.split(key, 6)

    # Case 1: module-sized logits / float targets (batch=8, num_labels=32).
    # Lane-dense reshape path, single tile.
    N, C = 8, 32
    logits = jax.random.normal(k1, (N, C), dtype=jnp.float32)
    targets = jax.random.uniform(k2, (N, C), dtype=jnp.float32)
    res = jax.block_until_ready(custom_bce_with_logits_loss(logits, targets, 0.5))
    ref = _ref_bce(logits, targets, 0.5)
    assert jnp.allclose(res, ref, rtol=1e-5, atol=1e-5), (res, ref)

    # Case 2: bf16 logits streamed natively, lane-dense multi-tile path
    # (flattens to (64, 512); max_tile_rows forces grid=4 at tiny size).
    N2, C2 = 1024, 32
    logits2 = jax.random.normal(k3, (N2, C2), dtype=jnp.bfloat16)
    targets2 = jax.random.uniform(k4, (N2, C2), dtype=jnp.float32)
    res2 = jax.block_until_ready(
        custom_bce_with_logits_loss(logits2, targets2, 1.25, max_tile_rows=16))
    ref2 = _ref_bce(logits2.astype(jnp.float32), targets2, 1.25)
    assert jnp.allclose(res2, ref2, rtol=1e-4, atol=1e-4), (res2, ref2)

    # Case 3: ragged fallback (C=33 not lane-dense), multi-tile with a masked
    # partial last tile (exercises the has_tail / pl.when path).
    N3, C3 = 40, 33
    logits3 = jax.random.normal(k5, (N3, C3), dtype=jnp.float32)
    targets3 = jax.random.uniform(k6, (N3, C3), dtype=jnp.float32)
    res3 = jax.block_until_ready(
        custom_bce_with_logits_loss(logits3, targets3, 2.0, max_tile_rows=16))
    ref3 = _ref_bce(logits3, targets3, 2.0)
    assert jnp.allclose(res3, ref3, rtol=1e-5, atol=1e-5), (res3, ref3)

    print("KERNEL_OK")
</pallas_src>

<mosaic_0001>
module attributes {stable_mosaic.version = 11 : i64} {
  func.func @_bce_partial_sum_kernel(%arg0: i32, %arg1: memref<1x256xf32, #tpu.memory_space<vmem>>, %arg2: memref<1x256xf32, #tpu.memory_space<vmem>>, %arg3: memref<1x8x128xf32, #tpu.memory_space<vmem>>) attributes {dimension_semantics = [#tpu.dimension_semantics<parallel>], iteration_bounds = array<i64: 1>, scalar_prefetch = 0 : i64, scratch_operands = 0 : i64, tpu.core_type = #tpu.core_type<tc>, window_params = [{transform_indices = @transform_0, window_bounds = array<i64: 1, 256>}, {transform_indices = @transform_1, window_bounds = array<i64: 1, 256>}, {transform_indices = @transform_2, window_bounds = array<i64: 1, 8, 128>}]} {
    %c0 = arith.constant 0 : index
    %c0_0 = arith.constant 0 : index
    %0 = vector.load %arg1[%c0, %c0_0] : memref<1x256xf32, #tpu.memory_space<vmem>>, vector<1x256xf32>
    %c0_1 = arith.constant 0 : index
    %c0_2 = arith.constant 0 : index
    %1 = vector.load %arg2[%c0_1, %c0_2] : memref<1x256xf32, #tpu.memory_space<vmem>>, vector<1x256xf32>
    %2 = math.absf %0 : vector<1x256xf32>
    %cst = arith.constant 0.000000e+00 : f32
    %3 = vector.broadcast %cst : f32 to vector<1x256xf32>
    %4 = arith.subf %3, %2 : vector<1x256xf32>
    %5 = math.exp %4 : vector<1x256xf32>
    %cst_3 = arith.constant 1.000000e+00 : f32
    %6 = vector.broadcast %cst_3 : f32 to vector<1x256xf32>
    %7 = arith.addf %6, %5 : vector<1x256xf32>
    %cst_4 = arith.constant 1.000000e+00 : f32
    %8 = vector.broadcast %cst_4 : f32 to vector<1x256xf32>
    %9 = arith.cmpf oeq, %7, %8 : vector<1x256xf32>
    %10 = math.log %7 : vector<1x256xf32>
    %cst_5 = arith.constant 1.000000e+00 : f32
    %11 = vector.broadcast %cst_5 : f32 to vector<1x256xf32>
    %12 = arith.subf %7, %11 : vector<1x256xf32>
    %13 = arith.divf %5, %12 : vector<1x256xf32>
    %14 = arith.mulf %10, %13 : vector<1x256xf32>
    %15 = arith.select %9, %5, %14 : vector<1x256xi1>, vector<1x256xf32>
    %cst_6 = arith.constant 0.000000e+00 : f32
    %16 = vector.broadcast %cst_6 : f32 to vector<1x256xf32>
    %17 = arith.maximumf %0, %16 : vector<1x256xf32>
    %18 = arith.mulf %0, %1 : vector<1x256xf32>
    %19 = arith.subf %17, %18 : vector<1x256xf32>
    %20 = arith.addf %19, %15 : vector<1x256xf32>
    %21 = vector.shape_cast %20 : vector<1x256xf32> to vector<1x1x256xf32>
    %cst_7 = arith.constant dense<0.000000e+00> : vector<1xf32>
    %22 = vector.multi_reduction <add>, %21, %cst_7 [1, 2] : vector<1x1x256xf32> to vector<1xf32>
    %23 = vector.shape_cast %22 : vector<1xf32> to vector<1x1x1xf32>
    %24 = vector.extract %23[0, 0, 0] : f32 from vector<1x1x1xf32>
    %cst_8 = arith.constant 0.000000e+00 : f32
    %25 = vector.broadcast %cst_8 : f32 to vector<1x8x128xf32>
    %26 = vector.broadcast %24 : f32 to vector<1x8x128xf32>
    %27 = arith.addf %25, %26 : vector<1x8x128xf32>
    %c0_9 = arith.constant 0 : index
    %c0_10 = arith.constant 0 : index
    %c0_11 = arith.constant 0 : index
    %28 = vector.load %arg3[%c0_9, %c0_10, %c0_11] : memref<1x8x128xf32, #tpu.memory_space<vmem>>, vector<1x8x128xf32>
    tpu.vector_store %arg3[%c0_9, %c0_10, %c0_11], %27 {strides = array<i32>} : memref<1x8x128xf32, #tpu.memory_space<vmem>>, vector<1x8x128xf32>,
    return
  }
  func.func @transform_0(%arg0: i32) -> (i32, i32) {
    %c0_i32 = arith.constant 0 : i32
    %c0_i32_0 = arith.constant 0 : i32
    return %arg0, %c0_i32 : i32, i32
  }
  func.func @transform_1(%arg0: i32) -> (i32, i32) {
    %c0_i32 = arith.constant 0 : i32
    %c0_i32_0 = arith.constant 0 : i32
    return %arg0, %c0_i32 : i32, i32
  }
  func.func @transform_2(%arg0: i32) -> (i32, i32, i32) {
    %c0_i32 = arith.constant 0 : i32
    %c0_i32_0 = arith.constant 0 : i32
    %c0_i32_1 = arith.constant 0 : i32
    return %arg0, %c0_i32, %c0_i32_0 : i32, i32, i32
  }
}

</mosaic_0001>

<bundles_post_ra>
// kernel: tpu_custom_call.1
= control target key start
LH: loop header
LB: loop body
LE: loop exit
PB: predicated region body
PF: predicated region fallthrough
CT: control target
= control target key end

     0   :  { %7 = vsyncpa [#allocation3], 0  ;;  %s188_s0 = inlined_call_operand.hbm [shape: f32[1,256], index: 0, kind: input, shape index: {}]   ;;  %s189_s1 = inlined_call_operand.vmem [shape: f32[1,256], index: 1, kind: input, shape index: {}]   ;;  %s190_s2 = inlined_call_operand.hbm [shape: f32[1,8,128], index: 2, kind: output, shape index: {}]  }
   0x1   :  { %8 = vsyncpa [#allocation4], 0  ;;  %s144_s9 = smov [#allocation2]   ;;  %s96_s13 = scalar_lea.hbm %s188_s0, 32 }
   0x2   :  { %s15_s10 = sshll.u32 %s144_s9, 4  ;;  %p97_p0 = scmp.ne.s32.totalorder %s188_s0, %s96_s13  ;;  %s16_s10 = int_to_ptr.vmem [resolvable:$true] %s15_s10 }
   0x3   :  { %p100_p1 = scmp.lt.u32.totalorder %s96_s13, %s188_s0 }
   0x5   :  { %p102_p2 = pnand %p100_p1, %p97_p0 }
   0x7   :  { %105 = shalt.err (!%p102_p2)
}
   0x8   :  { %s106_s18 = scalar_lea.vmem %s16_s10, 32  ;;  %p111_p4 = scmp.lt.s32.totalorder %s16_s10, %s16_s10 }
   0x9   :  { %p107_p3 = scmp.ne.s32.totalorder %s16_s10, %s106_s18  ;;  %p112_p5 = scmp.lt.s32.totalorder %s106_s18, %s106_s18 }
   0xb   :  { %p113_p6 = por %p112_p5, %p111_p4 }
   0xd   :  { %p114_p7 = pnand %p113_p6, %p107_p3 }
   0xf   :  { %117 = shalt.err (!%p114_p7)
}
  0x10   :  { %18 = dma.hbm_to_vmem [thread:$0]  %s188_s0, 32, %s16_s10, [#allocation3]  }
  0x11   :  { %140 = dma.done.wait [#allocation3], 32  }
  0x12   :  { %141 = vsyncadd [#allocation3], 4294967264  ;;  %v24_v0 = vld [vmem:[#allocation2] sm:$0x3]  ;;  %v44_v8 = vlaneseq  ;;  %vm54_vm1 = vcmask 1040384   ;;  %s145_s0 = smov [#allocation5]  }
  0x13   :  { %v26_v1 = vand.u32 2147483647, %v24_v0  ;;  %v25_v7 = vld [vmem:[%s189_s1] sm:$0x3]  ;;  %v39_v10 = vmax.f32 %v24_v0, 0.0  ;;  %s76_s1 = sshll.u32 %s145_s0, 4  ;;  %s77_s1 = int_to_ptr.vmem [resolvable:$true] %s76_s1 }
  0x14   :  { %v40_v11 = vmul.f32 %v25_v7, %v24_v0  ;;  %v45_v14 = vshrl.u32 %v44_v8, 7  ;;  %s118_s24 = scalar_lea.vmem %s77_s1, 128  ;;  %p123_p9 = scmp.lt.s32.totalorder %s77_s1, %s77_s1 }
  0x15   :  { %v27_v2 = vsub.f32 0.0, %v26_v1  ;;  %p119_p8 = scmp.ne.s32.totalorder %s77_s1, %s118_s24  ;;  %p124_p10 = scmp.lt.s32.totalorder %s118_s24, %s118_s24 }
  0x16   :  { %v41_v16 = vsub.f32 %v39_v10, %v40_v11  ;;  %v46_v18 = vsub.s32 0, %v45_v14  ;;  %v50_v19 = vsub.s32 1, %v45_v14 }
  0x17   :  { %v28_v3 = vmul.f32 1.442695, %v27_v2  ;;  %p125_p11 = por %p124_p10, %p123_p9 }
  0x19   :  { %90 = vpow2.f32 %v28_v3  ;;  %p126_p12 = pnand %p125_p11, %p119_p8 }
  0x23   :  { %v91_v4 = vpop.eup %90 }
  0x24   :  { %v30_v5 = vadd.f32 1.0, %v91_v4 }
  0x26   :  { %92 = vlog2.f32 %v30_v5  ;;  %v85_v6 = vadd.f32 -1.0, %v30_v5  ;;  %vm31_vm0 = vcmp.eq.f32.partialorder %v30_v5, 1.0 }
  0x28   :  { %94 = vrcp.f32 %v85_v6 }
  0x30   :  { %v93_v9 = vpop.eup %92 }
  0x31   :  { %v33_v12 = vmul.f32 0.6931472, %v93_v9 }
  0x32   :  { %v95_v13 = vpop.eup %94 }
  0x33   :  { %v36_v15 = vmul.f32 %v95_v13, %v91_v4 }
  0x35   :  { %v37_v17 = vmul.f32 %v36_v15, %v33_v12 }
  0x37   :  { %v38_v20 = vsel %vm31_vm0, %v91_v4, %v37_v17 }
  0x38   :  { %v42_v21 = vadd.f32 %v41_v16, %v38_v20 }
  0x3a   :  { %v47_v22 = vrot.slane %v42_v21, %v46_v18  ;;  %v51_v23 = vrot.slane %v42_v21, %v50_v19 }
  0x3c   :  { %v55_v24 = vsel %vm54_vm1, %v47_v22, 0.0  ;;  %v56_v25 = vsel %vm54_vm1, %v51_v23, 0.0 }
  0x3d   :  { %v57_v26 = vadd.f32 %v56_v25, %v55_v24 }
  0x3f   :  { %58 = vadd.xlane.f32.xlu0 %v57_v26 }
  0xcc   :  { %v59_v27 = vpop.xlane.xlu0 %58 }
  0xcd   :  { %v60_v28 = vrot.slane %v59_v27, 4 }
  0xcf   :  { %v61_v29 = vadd.f32 %v60_v28, %v59_v27 }
  0xd1   :  { %v62_v30 = vrot.slane %v61_v29, 2 }
  0xd3   :  { %v63_v31 = vadd.f32 %v62_v30, %v61_v29 }
  0xd5   :  { %v64_v32 = vrot.slane %v63_v31, 1 }
  0xd7   :  { %v65_v33 = vadd.f32 %v64_v32, %v63_v31 }
  0xd9   :  { %86 = vpush %v65_v33 }
 0x10a   :  { %s87_s23 = spop %86 }
 0x10b   :  { %v67_v34 = vstv %s87_s23 }
 0x10c   :  { %69 = vst [vmem:[#allocation5] sm:$0xff] %v67_v34 }
 0x10d   :  { %129 = shalt.err (!%p126_p12)
}
 0x10e   :  { %s130_s27 = scalar_lea.hbm %s190_s2, 128 }
 0x10f   :  { %p131_p13 = scmp.ne.s32.totalorder %s190_s2, %s130_s27  ;;  %p134_p0 = scmp.lt.u32.totalorder %s130_s27, %s190_s2 }
 0x111   :  { %p136_p1 = pnand %p134_p0, %p131_p13 }
 0x113   :  { %139 = shalt.err (!%p136_p1)
}
 0x114   :  { %79 = dma.vmem_to_hbm [thread:$0]  %s77_s1, 128, %s190_s2, [#allocation4]  }
 0x115   :  { %142 = dma.done.wait [#allocation4], 128  }
 0x116   :  { %143 = vsyncadd [#allocation4], 4294967168 }
 0x117   :  { %83 = vsyncpa [#allocation3], 1 }
 0x118   :  { %84 = vsyncpa [#allocation4], 1 }

</bundles_post_ra>
